<compile_context>
chip_gen: v7x
topology: tpu7x:2x2x1
jax: 0.10.0
libtpu: 0.0.40
codegen_flags: <defaults>
</compile_context>

<pallas_src>
import functools
import math

import jax
import jax.numpy as jnp
from jax.experimental import pallas as pl
from jax.experimental.pallas import tpu as pltpu


# --------------------------------------------------------------------------
# Kernel
# --------------------------------------------------------------------------
def _make_kernel(fold_trig):
    def kernel(w_ref, p_ref, x_ref, o_ref):
        # w_ref : SMEM (2,) f32                  [fc_real.weight, fc_imag.weight]
        # p_ref : VMEM (b_blk, 1, 1, L) phi      (fold_trig=True)   or
        #         VMEM (b_blk, 2, 1, L) cos/sin  (fallback)
        # x_ref : VMEM (b_blk, 2, r_blk, L)      channel 0 = real, 1 = imag
        # o_ref : VMEM (b_blk, 2, r_blk, L)
        w_r = w_ref[0]
        w_i = w_ref[1]

        if fold_trig:
            ph = p_ref[:, 0]                     # (b_blk, 1, L) f32
            c = jnp.cos(ph) * w_r                # EUP transcendentals (free slot)
            s = jnp.sin(ph) * w_i
        else:
            c = p_ref[:, 0] * w_r                # precomputed cos(phi) row
            s = p_ref[:, 1] * w_i                # precomputed sin(phi) row

        xr = x_ref[:, 0]                         # (b_blk, r_blk, L)
        xi = x_ref[:, 1]

        # (b_blk, 1, L) broadcasts over the sublane (r) axis -- pure VPU work.
        o_ref[:, 0] = (xr * c - xi * s).astype(o_ref.dtype)
        o_ref[:, 1] = (xr * s + xi * c).astype(o_ref.dtype)

    return kernel


# --------------------------------------------------------------------------
# Capability / hardware helpers
# --------------------------------------------------------------------------
@functools.lru_cache(maxsize=1)
def _in_kernel_trig_supported():
    """True iff Mosaic can lower jnp.sin / jnp.cos inside a Pallas TPU kernel."""
    def k(x_ref, o_ref):
        o_ref[...] = jnp.cos(x_ref[...]) + jnp.sin(x_ref[...])

    try:
        f = pl.pallas_call(
            k, out_shape=jax.ShapeDtypeStruct((8, 128), jnp.float32))
        jax.block_until_ready(f(jnp.zeros((8, 128), jnp.float32)))
        return True
    except Exception:
        return False


def _physical_vmem_bytes():
    try:
        info = pltpu.get_tpu_info()
        v = getattr(info, "vmem_capacity_bytes", None)
        if v:
            return int(v)
    except Exception:
        pass
    return 64 * 1024 * 1024  # conservative (v7x per-TensorCore)


def _sublane_align(itemsize):
    # f32 -> 8, bf16 -> 16, int8/fp8 -> 32 sublanes per native tile.
    return {4: 8, 2: 16, 1: 32}.get(itemsize, 8)


def _divisors(n):
    return [d for d in range(1, n + 1) if n % d == 0]


def _choose_tiles(B, R, L, itemsize, budget_bytes):
    align = _sublane_align(itemsize)
    row_bytes = 2 * L * itemsize                      # one (2, 1, L) slab of x

    # r tiles must divide R exactly (no ragged trailing tile) and be
    # dtype-sublane-aligned, unless they cover R entirely (always legal).
    r_cands = sorted({d for d in _divisors(R) if d % align == 0} | {R})
    fit = [r for r in r_cands if r * row_bytes <= budget_bytes]
    r_blk = max(fit) if fit else min(r_cands)

    # Extend the block over the batch axis when D*T is small (amortizes the
    # ~0.35us per-grid-step overhead).
    b_cands = _divisors(B)
    fit_b = [b for b in b_cands if b * r_blk * row_bytes <= budget_bytes]
    b_blk = max(fit_b) if fit_b else 1

    # v7x megacore: make sure both TensorCores get work whenever the problem
    # can be split at all (no effect on single-TC v5e/v6e).
    if (B // b_blk) * (R // r_blk) < 2:
        if B >= 2:
            b_blk = max(d for d in b_cands if d <= B // 2)
        else:
            smaller = [r for r in r_cands if r < R]
            if smaller:
                r_blk = max(smaller)
    return b_blk, r_blk


# --------------------------------------------------------------------------
# Wrapper
# --------------------------------------------------------------------------
def complex_phase_corrector(x, phi, w_real, w_imag, *,
                            block_budget_bytes=None,
                            vmem_limit_bytes=None,
                            fold_trig=None):
    """x: (B, M, D, T) with channels 0/1 = real/imag; phi: (B, T).

    Returns (B, 2, D, T), matching ComplexPhaseCorrector.forward.
    """
    B, M, D, T = x.shape
    assert M >= 2, "ComplexPhaseCorrector needs real/imag channels (M >= 2)"
    if M > 2:
        # PyTorch ignores channels >= 2; slicing materializes a copy, so prefer
        # passing M == 2 inputs for the streaming fast path.
        x = x[:, :2]
    dtype = x.dtype
    itemsize = jnp.dtype(dtype).itemsize

    # ---- chip-aware VMEM budgeting --------------------------------------
    if vmem_limit_bytes is None:
        vmem_limit_bytes = min(_physical_vmem_bytes() // 2, 64 * 1024 * 1024)
    if block_budget_bytes is None:
        # Pipeline holds ~4x the x/out block (double-buffered input + output).
        block_budget_bytes = max(512 * 1024, vmem_limit_bytes // 8)

    # ---- lane-dense repack of the trailing (D, T) axes -------------------
    # Phase factors depend only on t, so flattening (D, T) -> (R, L) with
    # L = d_rep*T (a multiple of 128 when possible) keeps a single tiled
    # (1, L) factor row broadcastable over sublanes while making every store
    # lane-dense.  The reshape is free (contiguous); x is never transposed.
    m_rep = 128 // math.gcd(T, 128)
    d_rep = m_rep if (D % m_rep == 0) else 1
    if d_rep == 1 and T % 128 != 0:
        # TODO(synk): T is not a 128-multiple and D cannot absorb the repack
        # factor, so stores fall back to masked vst.msk.  Pad T (or make D a
        # multiple of 128/gcd(T,128)) at the producer for full HBM roofline.
        pass
    L = d_rep * T
    R = D // d_rep
    x_r = x.reshape(B, 2, R, L)

    # ---- phase factors ----------------------------------------------------
    phi32 = jnp.asarray(phi, jnp.float32)
    phi_t = jnp.tile(phi32, (1, d_rep))               # (B, L): phi_t[b,l] = phi[b, l%T]
    if fold_trig is None:
        fold_trig = _in_kernel_trig_supported()
    if fold_trig:
        p = phi_t.reshape(B, 1, 1, L)                 # trig done in-kernel (EUP)
    else:
        p = jnp.stack([jnp.cos(phi_t), jnp.sin(phi_t)],
                      axis=1).reshape(B, 2, 1, L)
    pc = p.shape[1]

    # Scalar Linear(1, 1, bias=False) weights -> SMEM.
    params = jnp.stack([jnp.asarray(w_real, jnp.float32).reshape(()),
                        jnp.asarray(w_imag, jnp.float32).reshape(())])

    # ---- grid / block selection -------------------------------------------
    b_blk, r_blk = _choose_tiles(B, R, L, itemsize, block_budget_bytes)
    grid = (B // b_blk, R // r_blk)

    x_spec = pl.BlockSpec((b_blk, 2, r_blk, L), lambda b, r: (b, 0, r, 0))
    p_spec = pl.BlockSpec((b_blk, pc, 1, L), lambda b, r: (b, 0, 0, 0))
    w_spec = pl.BlockSpec(memory_space=pltpu.MemorySpace.SMEM)

    out = pl.pallas_call(
        _make_kernel(fold_trig),
        out_shape=jax.ShapeDtypeStruct((B, 2, R, L), dtype),
        grid=grid,
        in_specs=[w_spec, p_spec, x_spec],
        out_specs=x_spec,
        compiler_params=pltpu.CompilerParams(
            dimension_semantics=("parallel", "parallel"),
            vmem_limit_bytes=vmem_limit_bytes),
    )(params, p, x_r)

    return out.reshape(B, 2, D, T)


# --------------------------------------------------------------------------
# Pure-JAX reference (transliteration of the PyTorch forward)
# --------------------------------------------------------------------------
def _reference(x, phi, w_real, w_imag):
    w_r = jnp.asarray(w_real, jnp.float32).reshape(())
    w_i = jnp.asarray(w_imag, jnp.float32).reshape(())
    xp = jnp.transpose(x, (0, 2, 3, 1))                 # b m d t -> b d t m
    cos_phi = jnp.cos(phi)[:, None, :, None]            # b 1 t 1
    sin_phi = jnp.sin(phi)[:, None, :, None]            # b 1 t 1
    fr_cos = cos_phi * w_r                               # fc_real(cos_phi)
    fi_sin = sin_phi * w_i                               # fc_imag(sin_phi)
    x_real = xp[..., 0:1] * fr_cos - xp[..., 1:2] * fi_sin
    x_imag = xp[..., 0:1] * fi_sin + xp[..., 1:2] * fr_cos
    out = jnp.concatenate([x_real, x_imag], axis=-1)     # b d t 2
    return jnp.transpose(out, (0, 3, 1, 2))              # b d t m -> b m d t


if __name__ == "__main__":
    B, M, D, T = 2, 2, 16, 16

    key = jax.random.PRNGKey(0)
    kx, kphi, kwr, kwi = jax.random.split(key, 4)

    x = jax.random.normal(kx, (B, M, D, T), dtype=jnp.float32)
    phi = jax.random.uniform(kphi, (B, T), jnp.float32, -3.1415926, 3.1415926)
    # PyTorch nn.Linear(1, 1, bias=False) init: U(-1/sqrt(1), 1/sqrt(1)).
    w_real = jax.random.uniform(kwr, (1, 1), jnp.float32, -1.0, 1.0)
    w_imag = jax.random.uniform(kwi, (1, 1), jnp.float32, -1.0, 1.0)

    out = jax.block_until_ready(complex_phase_corrector(x, phi, w_real, w_imag))
    ref = _reference(x, phi, w_real, w_imag)

    assert out.shape == (B, 2, D, T), out.shape
    assert jnp.allclose(out, ref, atol=1e-4, rtol=1e-4), (
        float(jnp.max(jnp.abs(out - ref))))
    print("KERNEL_OK")
</pallas_src>

<mosaic_0001>
module attributes {stable_mosaic.version = 11 : i64} {
  func.func @k(%arg0: memref<8x128xf32, #tpu.memory_space<vmem>>, %arg1: memref<8x128xf32, #tpu.memory_space<vmem>>) attributes {dimension_semantics = [], scalar_prefetch = 0 : i64, scratch_operands = 0 : i64, tpu.core_type = #tpu.core_type<tc>} {
    %c0 = arith.constant 0 : index
    %c0_0 = arith.constant 0 : index
    %0 = vector.load %arg0[%c0, %c0_0] : memref<8x128xf32, #tpu.memory_space<vmem>>, vector<8x128xf32>
    %1 = math.cos %0 : vector<8x128xf32>
    %c0_1 = arith.constant 0 : index
    %c0_2 = arith.constant 0 : index
    %2 = vector.load %arg0[%c0_1, %c0_2] : memref<8x128xf32, #tpu.memory_space<vmem>>, vector<8x128xf32>
    %3 = math.sin %2 : vector<8x128xf32>
    %4 = arith.addf %1, %3 : vector<8x128xf32>
    %c0_3 = arith.constant 0 : index
    %c0_4 = arith.constant 0 : index
    %5 = vector.load %arg1[%c0_3, %c0_4] : memref<8x128xf32, #tpu.memory_space<vmem>>, vector<8x128xf32>
    tpu.vector_store %arg1[%c0_3, %c0_4], %4 {strides = array<i32>} : memref<8x128xf32, #tpu.memory_space<vmem>>, vector<8x128xf32>,
    return
  }
}

module attributes {stable_mosaic.version = 11 : i64} {
  func.func @kernel(%arg0: i32, %arg1: i32, %arg2: memref<2xf32, #tpu.memory_space<smem>>, %arg3: memref<1x2x1x128xf32, #tpu.memory_space<vmem>>, %arg4: memref<1x2x2x128xf32, #tpu.memory_space<vmem>>, %arg5: memref<1x2x2x128xf32, #tpu.memory_space<vmem>>) attributes {dimension_semantics = [#tpu.dimension_semantics<parallel>, #tpu.dimension_semantics<parallel>], iteration_bounds = array<i64: 2, 1>, scalar_prefetch = 0 : i64, scratch_operands = 0 : i64, tpu.core_type = #tpu.core_type<tc>, window_params = [{transform_indices = @transform_0, window_bounds = array<i64: 2>}, {transform_indices = @transform_1, window_bounds = array<i64: 1, 2, 1, 128>}, {transform_indices = @transform_2, window_bounds = array<i64: 1, 2, 2, 128>}, {transform_indices = @transform_3, window_bounds = array<i64: 1, 2, 2, 128>}]} {
    %c0 = arith.constant 0 : index
    %0 = memref.load %arg2[%c0] : memref<2xf32, #tpu.memory_space<smem>>
    %c1 = arith.constant 1 : index
    %1 = memref.load %arg2[%c1] : memref<2xf32, #tpu.memory_space<smem>>
    %c0_0 = arith.constant 0 : index
    %c0_1 = arith.constant 0 : index
    %c0_2 = arith.constant 0 : index
    %c0_3 = arith.constant 0 : index
    %2 = vector.load %arg3[%c0_0, %c0_1, %c0_2, %c0_3] : memref<1x2x1x128xf32, #tpu.memory_space<vmem>>, vector<1x1x1x128xf32>
    %3 = vector.shape_cast %2 : vector<1x1x1x128xf32> to vector<1x1x128xf32>
    %4 = vector.broadcast %0 : f32 to vector<1x1x128xf32>
    %5 = arith.mulf %3, %4 : vector<1x1x128xf32>
    %c0_4 = arith.constant 0 : index
    %c1_5 = arith.constant 1 : index
    %c0_6 = arith.constant 0 : index
    %c0_7 = arith.constant 0 : index
    %6 = vector.load %arg3[%c0_4, %c1_5, %c0_6, %c0_7] : memref<1x2x1x128xf32, #tpu.memory_space<vmem>>, vector<1x1x1x128xf32>
    %7 = vector.shape_cast %6 : vector<1x1x1x128xf32> to vector<1x1x128xf32>
    %8 = vector.broadcast %1 : f32 to vector<1x1x128xf32>
    %9 = arith.mulf %7, %8 : vector<1x1x128xf32>
    %c0_8 = arith.constant 0 : index
    %c0_9 = arith.constant 0 : index
    %c0_10 = arith.constant 0 : index
    %c0_11 = arith.constant 0 : index
    %10 = vector.load %arg4[%c0_8, %c0_9, %c0_10, %c0_11] : memref<1x2x2x128xf32, #tpu.memory_space<vmem>>, vector<1x1x2x128xf32>
    %11 = vector.shape_cast %10 : vector<1x1x2x128xf32> to vector<1x2x128xf32>
    %c0_12 = arith.constant 0 : index
    %c1_13 = arith.constant 1 : index
    %c0_14 = arith.constant 0 : index
    %c0_15 = arith.constant 0 : index
    %12 = vector.load %arg4[%c0_12, %c1_13, %c0_14, %c0_15] : memref<1x2x2x128xf32, #tpu.memory_space<vmem>>, vector<1x1x2x128xf32>
    %13 = vector.shape_cast %12 : vector<1x1x2x128xf32> to vector<1x2x128xf32>
    %14 = vector.broadcast %5 : vector<1x1x128xf32> to vector<1x2x128xf32>
    %15 = arith.mulf %11, %14 : vector<1x2x128xf32>
    %16 = vector.broadcast %9 : vector<1x1x128xf32> to vector<1x2x128xf32>
    %17 = arith.mulf %13, %16 : vector<1x2x128xf32>
    %18 = arith.subf %15, %17 : vector<1x2x128xf32>
    %c0_16 = arith.constant 0 : index
    %c0_17 = arith.constant 0 : index
    %c0_18 = arith.constant 0 : index
    %c0_19 = arith.constant 0 : index
    %19 = vector.load %arg5[%c0_16, %c0_17, %c0_18, %c0_19] : memref<1x2x2x128xf32, #tpu.memory_space<vmem>>, vector<1x1x2x128xf32>
    %20 = vector.shape_cast %19 : vector<1x1x2x128xf32> to vector<1x2x128xf32>
    %21 = vector.shape_cast %18 : vector<1x2x128xf32> to vector<1x1x2x128xf32>
    tpu.vector_store %arg5[%c0_16, %c0_17, %c0_18, %c0_19], %21 {strides = array<i32>} : memref<1x2x2x128xf32, #tpu.memory_space<vmem>>, vector<1x1x2x128xf32>,
    %22 = vector.broadcast %9 : vector<1x1x128xf32> to vector<1x2x128xf32>
    %23 = arith.mulf %11, %22 : vector<1x2x128xf32>
    %24 = vector.broadcast %5 : vector<1x1x128xf32> to vector<1x2x128xf32>
    %25 = arith.mulf %13, %24 : vector<1x2x128xf32>
    %26 = arith.addf %23, %25 : vector<1x2x128xf32>
    %c0_20 = arith.constant 0 : index
    %c1_21 = arith.constant 1 : index
    %c0_22 = arith.constant 0 : index
    %c0_23 = arith.constant 0 : index
    %27 = vector.load %arg5[%c0_20, %c1_21, %c0_22, %c0_23] : memref<1x2x2x128xf32, #tpu.memory_space<vmem>>, vector<1x1x2x128xf32>
    %28 = vector.shape_cast %27 : vector<1x1x2x128xf32> to vector<1x2x128xf32>
    %29 = vector.shape_cast %26 : vector<1x2x128xf32> to vector<1x1x2x128xf32>
    tpu.vector_store %arg5[%c0_20, %c1_21, %c0_22, %c0_23], %29 {strides = array<i32>} : memref<1x2x2x128xf32, #tpu.memory_space<vmem>>, vector<1x1x2x128xf32>,
    return
  }
  func.func @transform_0(%arg0: i32, %arg1: i32) -> i32 {
    %c0_i32 = arith.constant 0 : i32
    %c0_i32_0 = arith.constant 0 : i32
    return %c0_i32 : i32
  }
  func.func @transform_1(%arg0: i32, %arg1: i32) -> (i32, i32, i32, i32) {
    %c0_i32 = arith.constant 0 : i32
    %c0_i32_0 = arith.constant 0 : i32
    %c0_i32_1 = arith.constant 0 : i32
    %c0_i32_2 = arith.constant 0 : i32
    return %arg0, %c0_i32, %c0_i32_0, %c0_i32_1 : i32, i32, i32, i32
  }
  func.func @transform_2(%arg0: i32, %arg1: i32) -> (i32, i32, i32, i32) {
    %c0_i32 = arith.constant 0 : i32
    %c0_i32_0 = arith.constant 0 : i32
    %c0_i32_1 = arith.constant 0 : i32
    return %arg0, %c0_i32, %arg1, %c0_i32_0 : i32, i32, i32, i32
  }
  func.func @transform_3(%arg0: i32, %arg1: i32) -> (i32, i32, i32, i32) {
    %c0_i32 = arith.constant 0 : i32
    %c0_i32_0 = arith.constant 0 : i32
    %c0_i32_1 = arith.constant 0 : i32
    return %arg0, %c0_i32, %arg1, %c0_i32_0 : i32, i32, i32, i32
  }
}

</mosaic_0001>

<bundles_post_ra>
// kernel: tpu_custom_call.1
= control target key start
LH: loop header
LB: loop body
LE: loop exit
PB: predicated region body
PF: predicated region fallthrough
CT: control target
= control target key end

     0   :  { %6 = vsyncpa [#allocation3], 0  ;;  %s381_s0 = inlined_call_operand.hbm [shape: f32[8,128], index: 0, kind: input, shape index: {}]   ;;  %s382_s1 = inlined_call_operand.hbm [shape: f32[8,128], index: 1, kind: output, shape index: {}]  }
   0x1   :  { %7 = vsyncpa [#allocation4], 0  ;;  %s318_s6 = smov [#allocation2]   ;;  %s270_s10 = scalar_lea.hbm %s381_s0, 128 }
   0x2   :  { %s14_s7 = sshll.u32 %s318_s6, 4  ;;  %p271_p0 = scmp.ne.s32.totalorder %s381_s0, %s270_s10  ;;  %s15_s7 = int_to_ptr.vmem [resolvable:$true] %s14_s7 }
   0x3   :  { %p274_p1 = scmp.lt.u32.totalorder %s270_s10, %s381_s0 }
   0x5   :  { %p276_p2 = pnand %p274_p1, %p271_p0 }
   0x7   :  { %279 = shalt.err (!%p276_p2)
}
   0x8   :  { %s280_s15 = scalar_lea.vmem %s15_s7, 128  ;;  %p285_p4 = scmp.lt.s32.totalorder %s15_s7, %s15_s7 }
   0x9   :  { %p281_p3 = scmp.ne.s32.totalorder %s15_s7, %s280_s15  ;;  %p286_p5 = scmp.lt.s32.totalorder %s280_s15, %s280_s15 }
   0xb   :  { %p287_p6 = por %p286_p5, %p285_p4 }
   0xd   :  { %p288_p7 = pnand %p287_p6, %p281_p3 }
   0xf   :  { %291 = shalt.err (!%p288_p7)
}
  0x10   :  { %17 = dma.hbm_to_vmem [thread:$0]  %s381_s0, 128, %s15_s7, [#allocation3]  }
  0x11   :  { %314 = dma.done.wait [#allocation3], 128  }
  0x12   :  { %315 = vsyncadd [#allocation3], 4294967168  ;;  %v348_v0 = vld [vmem:[#allocation2] sm:$0xff]  ;;  %v319_v12 = vmov 683565275   ;;  %s325_s0 = smov [#allocation5]  }
  0x13   :  { %v25_v1 = vand.u32 2139095040, %v348_v0  ;;  %v22_v3 = vand.u32 2147483647, %v348_v0  ;;  %v320_v14 = vmov 2475754826   ;;  %vm24_vm7 = vcmp.lt.s32.totalorder %v348_v0, 0 }
  0x14   :  { %v321_v16 = vmov 2131351028   ;;  %v322_v18 = vmov 2102212464   ;;  %v323_v20 = vmov 920167782   ;;  %vm114_vm15 = vweird.f32 %v348_v0 }
  0x15   :  { %v26_v2 = vshrl.u32 %v25_v1, 23  ;;  %v29_v6 = vand.u32 8388607, %v22_v3  ;;  %v324_v27 = vmov 1326507024   ;;  %s237_s18 = sshll.u32 %s325_s0, 4  ;;  %s238_s18 = int_to_ptr.vmem [resolvable:$true] %s237_s18 }
  0x16   :  { %vm23_vm8 = vcmp.le.f32.partialorder %v22_v3, 0.7853982  ;;  %s292_s19 = scalar_lea.vmem %s238_s18, 128  ;;  %p297_p9 = scmp.lt.s32.totalorder %s238_s18, %s238_s18 }
  0x17   :  { %v246_v4 = vadd.s32 4294967169, %v26_v2  ;;  %v30_v9 = vor.u32 8388608, %v29_v6  ;;  %p293_p8 = scmp.ne.s32.totalorder %s238_s18, %s292_s19  ;;  %p298_p10 = scmp.lt.s32.totalorder %s292_s19, %s292_s19 }
  0x19   :  { %v32_v5 = vadd.s32 1, %v246_v4  ;;  %v70_v29 = vshll.u32 %v30_v9, 8  ;;  %p299_p11 = por %p298_p10, %p297_p9 }
  0x1b   :  { %vm33_vm0 = vcmp.gt.s32.totalorder %v32_v5, 0  ;;  %p300_p12 = pnand %p299_p11, %p293_p8 }
  0x1c   :  { %v34_v7 = vsel %vm33_vm0, %v32_v5, 0 }
  0x1d   :  { %v36_v8 = vand.u32 31, %v34_v7  ;;  %v35_v10 = vshrl.u32 %v34_v7, 5 }
  0x1f   :  { %v37_v11 = vsub.s32 32, %v36_v8  ;;  %v39_v13 = vshll.u32 %v319_v12, %v36_v8  ;;  %v42_v15 = vshll.u32 %v320_v14, %v36_v8  ;;  %v45_v17 = vshll.u32 %v321_v16, %v36_v8 }
  0x20   :  { %v48_v19 = vshll.u32 %v322_v18, %v36_v8  ;;  %v51_v21 = vshll.u32 %v323_v20, %v36_v8  ;;  %vm54_vm1 = vcmp.lt.s32.totalorder %v35_v10, 1  ;;  %vm57_vm2 = vcmp.lt.s32.totalorder %v35_v10, 4 }
  0x21   :  { %v38_v22 = vshrl.u32 %v319_v12, %v37_v11  ;;  %v40_v23 = vshrl.u32 %v320_v14, %v37_v11  ;;  %v43_v24 = vshrl.u32 %v321_v16, %v37_v11  ;;  %v46_v25 = vshrl.u32 %v322_v18, %v37_v11 }
  0x22   :  { %v49_v26 = vshrl.u32 %v323_v20, %v37_v11  ;;  %v52_v28 = vshrl.u32 %v324_v27, %v37_v11  ;;  %vm55_vm3 = vcmp.lt.s32.totalorder %v35_v10, 2  ;;  %vm56_vm4 = vcmp.lt.s32.totalorder %v35_v10, 3 }
  0x23   :  { %v41_v30 = vor.u32 %v40_v23, %v39_v13  ;;  %v44_v31 = vor.u32 %v43_v24, %v42_v15  ;;  %v47_v32 = vor.u32 %v46_v25, %v45_v17 }
  0x24   :  { %v50_v33 = vor.u32 %v49_v26, %v48_v19  ;;  %v53_v34 = vor.u32 %v52_v28, %v51_v21 }
  0x25   :  { %v58_v35 = vsel %vm54_vm1, %v38_v22, %v41_v30  ;;  %v59_v36 = vsel %vm57_vm2, %v47_v32, 2102212464  ;;  %v62_v37 = vsel %vm54_vm1, %v41_v30, %v44_v31  ;;  %v66_v38 = vsel %vm54_vm1, %v44_v31, %v47_v32 }
  0x26   :  { %v60_v39 = vsel %vm56_vm4, %v44_v31, %v59_v36  ;;  %v63_v40 = vsel %vm57_vm2, %v50_v33, 920167782  ;;  %v67_v41 = vsel %vm57_vm2, %v53_v34, 1326507024 }
  0x27   :  { %v64_v42 = vsel %vm56_vm4, %v47_v32, %v63_v40  ;;  %v68_v43 = vsel %vm56_vm4, %v50_v33, %v67_v41  ;;  %v61_v44 = vsel %vm55_vm3, %v58_v35, %v60_v39 }
  0x28   :  { %v65_v45 = vsel %vm55_vm3, %v62_v37, %v64_v42  ;;  %v69_v46 = vsel %vm55_vm3, %v66_v38, %v68_v43  ;;  %v77_v51 = vmul.u32 %v70_v29, %v61_v44 }
  0x29   :  { %v354_v47 = vmul.u32.u64.low %v70_v29, %v69_v46  ;;  %v355_v48 = vmul.u32.u64.high %v70_v29, %v69_v46, %v354_v47  ;;  %v357_v49 = vmul.u32.u64.low %v70_v29, %v65_v45  ;;  %v358_v50 = vmul.u32.u64.high %v70_v29, %v65_v45, %v357_v49 }
  0x2b   :  { %vm79_vm5 = vc.u32 %v355_v48, %v357_v49  ;;  %v80_v52 = vadd.s32 1, %v358_v50  ;;  %v78_v63 = vadd.s32 %v357_v49, %v355_v48 }
  0x2d   :  { %v81_v53 = vsel %vm79_vm5, %v80_v52, %v358_v50 }
  0x2e   :  { %v82_v54 = vadd.s32 %v81_v53, %v77_v51 }
  0x30   :  { %v83_v55 = vadd.s32 536870912, %v82_v54 }
  0x32   :  { %v84_v56 = vshrl.u32 %v83_v55, 30 }
  0x34   :  { %v85_v57 = vshll.u32 %v84_v56, 30  ;;  %v108_v13 = vsub.s32 4, %v84_v56 }
  0x36   :  { %v86_v58 = vsub.s32 %v82_v54, %v85_v57  ;;  %v109_v16 = vsel %vm24_vm7, %v108_v13, %v84_v56 }
  0x37   :  { %v111_v19 = vsel %vm23_vm8, 0, %v109_v16 }
  0x38   :  { %v88_v59 = vsub.s32 0, %v86_v58  ;;  %v218_v20 = vadd.s32 3, %v111_v19  ;;  %v115_v21 = vand.u32 3, %v111_v19 }
  0x3a   :  { %v247_v60 = vmin.u32 %v88_v59, %v86_v58  ;;  %v219_v22 = vand.u32 3, %v218_v20  ;;  %vm120_vm9 = vcmp.eq.s32.totalorder %v115_v21, 2  ;;  %vm117_vm11 = vcmp.eq.s32.totalorder %v115_v21, 0 }
  0x3b   :  { %vm116_vm13 = vcmp.lt.s32.totalorder %v115_v21, 2 }
  0x3c   :  { %v90_v61 = vclz %v247_v60  ;;  %vm224_vm10 = vcmp.eq.s32.totalorder %v219_v22, 2  ;;  %vm221_vm12 = vcmp.eq.s32.totalorder %v219_v22, 0  ;;  %vm220_vm14 = vcmp.lt.s32.totalorder %v219_v22, 2 }
  0x3e   :  { %v248_v62 = vadd.s32 4294967294, %v90_v61 }
  0x40   :  { %vm249_vm6 = vcmp.lt.s32.totalorder %v248_v62, 0 }
  0x41   :  { %v93_v1 = vsel %vm249_vm6, 0, %v248_v62 }
  0x42   :  { %v94_v2 = vsub.s32 32, %v93_v1  ;;  %v95_v4 = vshll.u32 %v86_v58, %v93_v1  ;;  %v98_v5 = vsub.s32 4294967266, %v93_v1 }
  0x44   :  { %v96_v6 = vshrl.u32 %v78_v63, %v94_v2  ;;  %v99_v7 = vadd.s32 127, %v98_v5 }
  0x46   :  { %v97_v8 = vor.u32 %v96_v6, %v95_v4  ;;  %v100_v9 = vshll.u32 %v99_v7, 23 }
  0x48   :  { %v101_v10 = vor.u32 4788187, %v100_v9  ;;  %v104_v11 = vcvt.s32.f32 %v97_v8 }
  0x4a   :  { %v102_v12 = vand.u32 2147483647, %v101_v10 }
  0x4c   :  { %v105_v14 = vmul.f32 %v104_v11, %v102_v12 }
  0x4e   :  { %v106_v15 = vxor.u32 2147483648, %v105_v14 }
  0x50   :  { %v107_v17 = vsel %vm24_vm7, %v106_v15, %v105_v14 }
  0x51   :  { %v110_v18 = vsel %vm23_vm8, %v348_v0, %v107_v17 }
  0x52   :  { %266 = vcosq.f32 %v110_v18 }
  0x53   :  { %268 = vsinq.f32 %v110_v18 }
  0x5c   :  { %v267_v23 = vpop.eup %266 }
  0x5d   :  { %v269_v24 = vpop.eup %268  ;;  %v121_v25 = vxor.u32 2147483648, %v267_v23 }
  0x5e   :  { %v118_v3 = vxor.u32 2147483648, %v269_v24 }
  0x5f   :  { %v122_v26 = vsel %vm120_vm9, %v121_v25, %v269_v24  ;;  %v226_v27 = vsel %vm224_vm10, %v121_v25, %v269_v24 }
  0x60   :  { %v119_v28 = vsel %vm117_vm11, %v267_v23, %v118_v3  ;;  %v223_v29 = vsel %vm221_vm12, %v267_v23, %v118_v3 }
  0x61   :  { %v123_v30 = vsel %vm116_vm13, %v119_v28, %v122_v26  ;;  %v227_v31 = vsel %vm220_vm14, %v223_v29, %v226_v27 }
  0x62   :  { %v124_v32 = vsel %vm114_vm15, nan, %v123_v30  ;;  %v228_v33 = vsel %vm114_vm15, nan, %v227_v31 }
  0x63   :  { %v229_v34 = vadd.f32 %v228_v33, %v124_v32 }
  0x65   :  { %230 = vst [vmem:[#allocation5] sm:$0xff] %v229_v34 }
  0x66   :  { %303 = shalt.err (!%p300_p12)
}
  0x67   :  { %s304_s22 = scalar_lea.hbm %s382_s1, 128 }
  0x68   :  { %p305_p13 = scmp.ne.s32.totalorder %s382_s1, %s304_s22  ;;  %p308_p0 = scmp.lt.u32.totalorder %s304_s22, %s382_s1 }
  0x6a   :  { %p310_p1 = pnand %p308_p0, %p305_p13 }
  0x6c   :  { %313 = shalt.err (!%p310_p1)
}
  0x6d   :  { %240 = dma.vmem_to_hbm [thread:$0]  %s238_s18, 128, %s382_s1, [#allocation4]  }
  0x6e   :  { %316 = dma.done.wait [#allocation4], 128  }
  0x6f   :  { %317 = vsyncadd [#allocation4], 4294967168 }
  0x70   :  { %244 = vsyncpa [#allocation3], 1 }
  0x71   :  { %245 = vsyncpa [#allocation4], 1 }

// kernel: tpu_custom_call.1
= control target key start
LH: loop header
LB: loop body
LE: loop exit
PB: predicated region body
PF: predicated region fallthrough
CT: control target
= control target key end

     0   :  { %s978_s0 = inlined_call_operand.hbm [shape: f32[2], index: 0, kind: input, shape index: {}]   ;;  %s979_s1 = inlined_call_operand.hbm [shape: f32[2,2,1,128], index: 1, kind: input, shape index: {}]   ;;  %s980_s2 = inlined_call_operand.hbm [shape: f32[2,2,2,128], index: 2, kind: input, shape index: {}]   ;;  %s981_s3 = inlined_call_operand.hbm [shape: f32[2,2,2,128], index: 3, kind: output, shape index: {}]  }
   0x1   :  { %986 = sst [smem:[#allocation14_spill]] %s978_s0 }
   0x2   :  { %987 = sst [smem:[#allocation15_spill]] %s979_s1 }
   0x3   :  { %8 = vsyncpa [#allocation5], 0 }
   0x4   :  { %9 = vsyncpa [#allocation3], 0 }
   0x5   :  { %11 = vsyncpa [#allocation3 + $0x1], 0 }
   0x6   :  { %12 = vsyncpa [#allocation8], 0 }
   0x7   :  { %14 = vsyncpa [#allocation8 + $0x1], 0 }
   0x8   :  { %15 = vsyncpa [#allocation4], 0 }
   0x9   :  { %17 = vsyncpa [#allocation4 + $0x1], 0  ;;  %s733_s12 = smov 0   ;;  %s735_s13 = smov 0  }
   0xa   :  { %s737_s14 = smov 0   ;;  %s739_s15 = smov 0  }
   0xb   :  { %s741_s16 = smov 0   ;;  %s743_s17 = smov 0  }
   0xc LB: > { %s426_s18 = sadd.s32 4294967295, %s701_s17   ;;  %s427_s19 = sadd.s32 4294967294, %s701_s17   ;;  %s701_s17 = sphi %s743_s17, %s23_s17   ;;  %s697_s16 = sphi %s741_s16, %s1005_s16   ;;  %s693_s15 = sphi %s739_s15, %s1004_s15   ;;  %s689_s14 = sphi %s737_s14, %s1003_s14   ;;  %s685_s13 = sphi %s735_s13, %s1002_s13   ;;  %s681_s12 = sphi %s733_s12, %s1001_s12  }
   0xd   : > { %s63_s20 = sadd.s32 1, %s689_s14  ;;  %p70_p0 = scmp.ne.s32.totalorder %s689_s14, %s685_s13 }
   0xe   : > { %p71_p1 = scmp.eq.s32.totalorder %s701_s17, 0  ;;  %p76_p2 = scmp.ne.s32.totalorder %s685_s13, %s681_s12 }
   0xf   : > { %p771_p3 = scmp.eq.s32.totalorder %s426_s18, 0  ;;  %p130_p4 = scmp.eq.s32.totalorder %s426_s18, 1 }
  0x10   : > { %p72_p5 = por %p71_p1, %p70_p0  ;;  %p136_p6 = scmp.eq.s32.totalorder %s427_s19, 1 }
  0x11   : > { %s988_s21 = scalar_select %p771_p3, 1, 0 }
  0x12   : > { %p777_p7 = por %p771_p3, %p76_p2  ;;  %p781_p8 = por %p130_p4, %p70_p0 }
  0x13   : > { %p785_p9 = por %p136_p6, %p76_p2  ;;  %p428_p10 = scmp.ge.s32.totalorder %s701_s17, 1 }
  0x14   : > { %s989_s22 = scalar_select %p777_p7, 1, 0 }
  0x15   : > { %s990_s23 = scalar_select %p781_p8, 1, 0 }
  0x16   : > { %s991_s24 = scalar_select %p785_p9, 1, 0 }
  0x17   : > { %p143_p11 = scmp.lt.s32.totalorder %s701_s17, 3  ;;  %p480_p1 = scmp.lt.s32.totalorder %s701_s17, 2 }
  0x18   : > { %s798_s26 = sand.u32 1, %s689_s14   ;;  %s35_s28 = sadd.s32 1, %s697_s16 }
  0x19   : > { %p792_p13 = pnand %p428_p10, %p143_p11  ;;  %p802_p4 = pnand %p480_p1, %p72_p5 }
  0x1a   : > { %s431_s29 = sshll.u32 %s798_s26, 1  ;;  %p37_p6 = scmp.ge.s32.totalorder %s35_s28, 2 }
  0x1b   : > { %p464_p0 = pneg %p792_p13  ;;  %s994_s0 = sld [smem:[#allocation14_spill]] }
  0x1d   : > { %p465_p2 = pnand %p464_p0, %p771_p3 }
  0x1f   : > { %p540_p11 = pneg %p465_p2 }
  0x21   : > { %s538_s5 = scalar_lea.hbm %s994_s0, 16 }
  0x22   : > { %p539_p10 = scmp.ne.s32.totalorder %s994_s0, %s538_s5  ;;  %p545_p5 = scmp.lt.u32.totalorder %s538_s5, %s994_s0 }
  0x24   : > { %p541_p12 = pnand %p540_p11, %p539_p10 }
  0x26   : > { %p542_p9 = pneg %p541_p12 }
  0x28   : > { %p547_p1 = pnand %p545_p5, %p542_p9 }
  0x2a   : > { %550 = shalt.err (!%p547_p1)
}
  0x2b   : > { %s703_s10 = smov [#allocation2]   ;;  %s1007_s28 = smov (%p37_p6, %s35_s28), 0 }
  0x2c   : > { %467 = dma.hbm_to_smem (!%p465_p2), %s994_s0, 16, %s703_s10, [#allocation5]  }
  0x2d   : > { %s451_s19 = sshll.u32 %s697_s16, 5  ;;  %s60_s30 = ssub.s32 %s697_s16, %s1007_s28 }
  0x2e   : > { %s995_s1 = sld [smem:[#allocation15_spill]]  ;;  %p61_p9 = scmp.eq.s32.totalorder %s60_s30, 0 }
  0x2f   : > { %s169_s7 = scalar_lea.vmem [#allocation6], %s431_s29  ;;  %s166_s10 = scalar_lea.sflag [#allocation3], %s798_s26 }
  0x30   : > { %s176_s8 = sshll.u32 %s169_s7, 4  ;;  %p553_p0 = pneg %p802_p4  ;;  %s832_s8 = int_to_ptr.vmem [resolvable:$true] %s176_s8 }
  0x31   : > { %s837_s9 = scalar_select %p61_p9, %s689_s14, %s63_s20  }
  0x34   : > { %s830_s6 = scalar_lea.hbm %s995_s1, %s451_s19  ;;  %s556_s30 = scalar_lea.hbm %s995_s1, 64 }
  0x35   : > { %s551_s11 = scalar_lea.hbm %s830_s6, 32  ;;  %p557_p10 = scmp.lt.u32.totalorder %s830_s6, %s995_s1 }
  0x36   : > { %p552_p12 = scmp.ne.s32.totalorder %s830_s6, %s551_s11  ;;  %p558_p11 = scmp.lt.u32.totalorder %s556_s30, %s551_s11 }
  0x37   : > { %p560_p1 = scmp.lt.u32.totalorder %s551_s11, %s830_s6 }
  0x38   : > { %p554_p2 = pnand %p553_p0, %p552_p12  ;;  %p559_p5 = por %p558_p11, %p557_p10 }
  0x3a   : > { %p555_p6 = pneg %p554_p2  ;;  %p561_p9 = por %p560_p1, %p559_p5 }
  0x3c   : > { %p562_p8 = pnand %p561_p9, %p555_p6 }
  0x3e   : > { %565 = shalt.err (!%p562_p8)
}
  0x3f   : > { %s566_s20 = scalar_lea.vmem %s832_s8, 32  ;;  %s704_s5 = smov [#allocation6]  }
  0x40   : > { %p567_p12 = scmp.ne.s32.totalorder %s832_s8, %s566_s20  ;;  %s571_s7 = sshll.u32 %s704_s5, 4  ;;  %s572_s7 = int_to_ptr.vmem [resolvable:$false] %s571_s7 }
  0x41   : > { %s573_s18 = scalar_lea.vmem %s572_s7, 64  ;;  %p574_p3 = scmp.lt.s32.totalorder %s832_s8, %s572_s7 }
  0x42   : > { %p569_p2 = pnand %p567_p12, %p553_p0  ;;  %p575_p10 = scmp.lt.s32.totalorder %s573_s18, %s566_s20 }
  0x44   : > { %p570_p7 = pneg %p569_p2  ;;  %p576_p11 = por %p575_p10, %p574_p3 }
  0x46   : > { %p577_p5 = pnand %p576_p11, %p570_p7 }
  0x48   : > { %580 = shalt.err (!%p577_p5)
}
  0x49   : > { %s705_s11 = smov 16   ;;  %s706_s19 = smov 1  }
  0x4a   : > { %471 = dma.hbm_to_vmem [thread:$0]  (!%p802_p4), %s830_s6, 32, %s832_s8, %s166_s10, %s705_s11, %s705_s11, %s706_s19  }
  0x4b   : > { %s434_s30 = sshll.u32 %s798_s26, 2  ;;  %s452_s29 = sshll.u32 %s697_s16, 6 }
  0x4c   : > { %s872_s5 = scalar_lea.hbm %s980_s2, %s452_s29  ;;  %s190_s7 = scalar_lea.vmem [#allocation7], %s434_s30 }
  0x4d   : > { %s198_s18 = sshll.u32 %s190_s7, 4  ;;  %s187_s0 = scalar_lea.sflag [#allocation8], %s798_s26  ;;  %s874_s18 = int_to_ptr.vmem [resolvable:$true] %s198_s18 }
  0x4e   : > { %s581_s1 = scalar_lea.hbm %s872_s5, 64  ;;  %s586_s10 = scalar_lea.hbm %s980_s2, 128 }
  0x4f   : > { %p582_p3 = scmp.ne.s32.totalorder %s872_s5, %s581_s1  ;;  %p587_p6 = scmp.lt.u32.totalorder %s872_s5, %s980_s2 }
  0x50   : > { %p588_p1 = scmp.lt.u32.totalorder %s586_s10, %s581_s1  ;;  %p590_p12 = scmp.lt.u32.totalorder %s581_s1, %s872_s5 }
  0x51   : > { %p584_p7 = pnand %p582_p3, %p553_p0 }
  0x52   : > { %p589_p9 = por %p588_p1, %p587_p6 }
  0x53   : > { %p585_p8 = pneg %p584_p7 }
  0x54   : > { %p591_p2 = por %p590_p12, %p589_p9 }
  0x56   : > { %p592_p10 = pnand %p591_p2, %p585_p8 }
  0x58   : > { %595 = shalt.err (!%p592_p10)
}
  0x59   : > { %s596_s30 = scalar_lea.vmem %s874_s18, 64  ;;  %s707_s29 = smov [#allocation7]  }
  0x5a   : > { %p597_p11 = scmp.ne.s32.totalorder %s874_s18, %s596_s30  ;;  %s601_s4 = sshll.u32 %s707_s29, 4  ;;  %s602_s4 = int_to_ptr.vmem [resolvable:$false] %s601_s4 }
  0x5b   : > { %s603_s20 = scalar_lea.vmem %s602_s4, 128  ;;  %p604_p7 = scmp.lt.s32.totalorder %s874_s18, %s602_s4 }
  0x5c   : > { %p599_p5 = pnand %p597_p11, %p553_p0  ;;  %p605_p6 = scmp.lt.s32.totalorder %s603_s20, %s596_s30 }
  0x5e   : > { %p600_p3 = pneg %p599_p5  ;;  %p606_p1 = por %p605_p6, %p604_p7 }
  0x60   : > { %p607_p9 = pnand %p606_p1, %p600_p3 }
  0x62   : > { %610 = shalt.err (!%p607_p9)
}
  0x63   : > { %s708_s1 = smov 32   ;;  %s709_s7 = smov 2  }
  0x64   : > { %474 = dma.hbm_to_vmem [thread:$0]  (!%p802_p4), %s872_s5, 64, %s874_s18, %s187_s0, %s708_s1, %s708_s1, %s709_s7  }
  0x65   : > { %210 = sbr.rel (%p792_p13) target bundleno = 148 (0x94), region = 32  ;;  %p996_p0 = scmp.ne.s32.totalorder (!%p792_p13), %s988_s21, 0 }
  0x6c   : > { %664 = dma.done.wait (%p996_p0), [#allocation5], 16  }
  0x6d   : > { %666 = vsyncadd (%p996_p0), [#allocation5], 4294967280  ;;  %s909_s6 = sand.u32 1, %s685_s13   ;;  %p997_p8 = scmp.ne.s32.totalorder %s989_s22, 0 }
  0x6e   : > { %s439_s8 = sshll.u32 %s909_s6, 1  ;;  %s217_s10 = scalar_lea.sflag [#allocation3], %s909_s6 }
  0x6f   : > { %s220_s27 = scalar_lea.vmem [#allocation6], %s439_s8 }
  0x70   : > { %668 = dma.done.wait (%p997_p8), %s217_s10, 32  }
  0x71   : > { %670 = vsyncadd (%p997_p8), %s217_s10, 4294967264  ;;  %s440_s0 = sshll.u32 %s909_s6, 2  ;;  %s226_s21 = scalar_lea.sflag [#allocation8], %s909_s6 }
  0x72   : > { %s229_s25 = scalar_lea.vmem [#allocation7], %s440_s0 }
  0x73   : > { %672 = dma.done.wait (%p997_p8), %s226_s21, 64  }
  0x74   : > { %674 = vsyncadd (%p997_p8), %s226_s21, 4294967232 }
  0x75   : > { %234 = sfence }
  0x76   : > { %s258_s26 = sld [smem:[#allocation2]]  ;;  %v271_v0 = vlaneseq  ;;  %s442_s5 = sld [smem:[#allocation2 + $0x1]]  ;;  %v260_v2 = vld [vmem:[%s220_s27] sm:$0x1]  ;;  %v443_v3 = vld [vmem:[%s220_s27 + $0x1] sm:$0x1] }
  0x77   : > { %v267_v9 = vld [vmem:[%s229_s25] sm:$0x3]  ;;  %v444_v10 = vld [vmem:[%s229_s25 + $0x2] sm:$0x3]  ;;  %s257_s22 = scalar_lea.vmem [#allocation9], %s440_s0  ;;  %s453_s11 = sshll.u32 %s693_s15, 6 }
  0x78   : > { %v272_v1 = vshrl.u32 %v271_v0, 7  ;;  %s306_s18 = sshll.u32 %s257_s22, 4  ;;  %s929_s29 = scalar_lea.hbm %s981_s3, %s453_s11  ;;  %s924_s18 = int_to_ptr.vmem [resolvable:$true] %s306_s18 }
  0x79   : > { %s292_s4 = scalar_lea.sflag [#allocation4], %s909_s6  ;;  %s611_s15 = scalar_lea.vmem %s924_s18, 64 }
  0x7a   : > { %v273_v4 = vsub.s32 0, %v272_v1  ;;  %p612_p13 = scmp.ne.s32.totalorder %s924_s18, %s611_s15  ;;  %p998_p4 = scmp.ne.s32.totalorder %s990_s23, 0 }
  0x7b   : > { %s710_s20 = smov [#allocation9]  }
  0x7c   : > { %v261_v5 = vstv %s258_s26  ;;  %v265_v7 = vstv %s442_s5  ;;  %p613_p12 = pnand %p612_p13, %p998_p4  ;;  %s615_s1 = sshll.u32 %s710_s20, 4  ;;  %s616_s1 = int_to_ptr.vmem [resolvable:$false] %s615_s1 }
  0x7d   : > { %v262_v6 = vmul.f32 %v261_v5, %v260_v2  ;;  %v266_v8 = vmul.f32 %v443_v3, %v265_v7  ;;  %s617_s7 = scalar_lea.vmem %s616_s1, 128  ;;  %p618_p10 = scmp.lt.s32.totalorder %s924_s18, %s616_s1 }
  0x7e   : > { %p614_p2 = pneg %p613_p12  ;;  %p619_p11 = scmp.lt.s32.totalorder %s617_s7, %s611_s15 }
  0x7f   : > { %v274_v11 = vrot.slane %v262_v6, %v273_v4  ;;  %v281_v12 = vrot.slane %v266_v8, %v273_v4 }
  0x80   : > { %p620_p5 = por %p619_p11, %p618_p10 }
  0x81   : > { %v276_v13 = vmul.f32 %v274_v11, %v267_v9  ;;  %v287_v14 = vmul.f32 %v444_v10, %v274_v11  ;;  %v283_v15 = vmul.f32 %v444_v10, %v281_v12  ;;  %v286_v16 = vmul.f32 %v281_v12, %v267_v9 }
  0x82   : > { %p621_p3 = pnand %p620_p5, %p614_p2 }
  0x83   : > { %v284_v17 = vsub.f32 %v276_v13, %v283_v15  ;;  %v288_v18 = vadd.f32 %v287_v14, %v286_v16 }
  0x85   : > { %285 = vst [vmem:[%s257_s22] sm:$0x3] %v284_v17  ;;  %445 = vst [vmem:[%s257_s22 + $0x2] sm:$0x3] %v288_v18 }
  0x86   : > { %624 = shalt.err (!%p621_p3)
}
  0x87   : > { %s625_s8 = scalar_lea.hbm %s929_s29, 64  ;;  %s629_s0 = scalar_lea.hbm %s981_s3, 128 }
  0x88   : > { %p626_p7 = scmp.ne.s32.totalorder %s929_s29, %s625_s8  ;;  %p630_p9 = scmp.lt.u32.totalorder %s929_s29, %s981_s3 }
  0x89   : > { %p631_p0 = scmp.lt.u32.totalorder %s629_s0, %s625_s8  ;;  %p633_p13 = scmp.lt.u32.totalorder %s625_s8, %s929_s29 }
  0x8a   : > { %p627_p6 = pnand %p626_p7, %p998_p4 }
  0x8b   : > { %p632_p8 = por %p631_p0, %p630_p9 }
  0x8c   : > { %p628_p1 = pneg %p627_p6 }
  0x8d   : > { %p634_p12 = por %p633_p13, %p632_p8 }
  0x8f   : > { %p635_p2 = pnand %p634_p12, %p628_p1 }
  0x91   : > { %638 = shalt.err (!%p635_p2)
}
  0x92   : > { %s711_s26 = smov 32   ;;  %s712_s5 = smov 2  }
  0x93   : > { %462 = dma.vmem_to_hbm [thread:$0]  (%p998_p4), %s924_s18, 64, %s929_s29, %s292_s4, %s711_s26, %s711_s26, %s712_s5  }
  0x94 PF: > { %s321_s22 = sand.u32 1, %s681_s12   ;;  %p999_p10 = scmp.ne.s32.totalorder %s991_s24, 0 }
  0x95   : > { %p1000_p11 = scmp.ge.s32.totalorder %s701_s17, 2  ;;  %s322_s11 = scalar_lea.sflag [#allocation4], %s321_s22 }
  0x97   : > { %p476_p5 = pnand %p1000_p11, %p999_p10 }
  0x99   : > { %676 = dma.done.wait (!%p476_p5), %s322_s11, 64  }
  0x9a   : > { %678 = vsyncadd (!%p476_p5), %s322_s11, 4294967232  ;;  %s23_s17 = sadd.s32 1, %s701_s17   ;;  %s1001_s12 = smov %s685_s13 }
  0x9b   : > { %p20_p3 = scmp.ge.s32.totalorder %s23_s17, 4   ;;  %s1002_s13 = smov %s689_s14 }
  0x9c   : > { %s1003_s14 = smov %s837_s9  ;;  %s1004_s15 = smov %s697_s16 }
  0x9d   : > { %s1005_s16 = smov %s1007_s28  ;;  %22 = sbr.rel (!%p20_p3) target bundleno = 12 (0xc), region = 98 }
  0xa4   :  { %327 = vsyncpa [#allocation3], 1 }
  0xa5   :  { %329 = vsyncpa [#allocation3 + $0x1], 1 }
  0xa6   :  { %330 = vsyncpa [#allocation8], 1 }
  0xa7   :  { %332 = vsyncpa [#allocation8 + $0x1], 1 }
  0xa8   :  { %333 = vsyncpa [#allocation4], 1 }
  0xa9   :  { %335 = vsyncpa [#allocation4 + $0x1], 1 }
  0xaa   :  { %336 = vsyncpa [#allocation5], 1 }
  0xab   :  { %338 = vsyncpa [#allocation5 + $0x1], 1 }

</bundles_post_ra>
